<compile_context>
chip_gen: v7x
topology: tpu7x:2x2x1
jax: 0.10.0
libtpu: 0.0.40
codegen_flags: <defaults>
</compile_context>

<pallas_src>
import jax
import jax.numpy as jnp
from jax.experimental import pallas as pl
from jax.experimental.pallas import tpu as pltpu


def dice_wce_kernel(x_ref, t_ref, inter_ref, card_ref, ce_ref):
    h = pl.program_id(1)

    # First visit of this image's accumulator blocks -> zero them.
    @pl.when(h == 0)
    def _():
        inter_ref[...] = jnp.zeros_like(inter_ref)
        card_ref[...] = jnp.zeros_like(card_ref)
        ce_ref[...] = jnp.zeros_like(ce_ref)

    x = x_ref[0].astype(jnp.float32)        # (C, TH, W) logits
    t = t_ref[0]                            # (TH, W) int32 class ids

    # Numerically stable softmax over the class axis (axis 0).
    x_max = jnp.max(x, axis=0, keepdims=True)            # (1, TH, W)
    ex = jnp.exp(x - x_max)                               # (C, TH, W)
    denom = jnp.sum(ex, axis=0, keepdims=True)            # (1, TH, W)
    inv = pl.reciprocal(denom)                            # one recip / pixel (exact)
    probas = ex * inv                                     # (C, TH, W)

    # One-hot mask of the target class.
    cls = jax.lax.broadcasted_iota(jnp.int32, x.shape, dimension=0)
    onehot = (cls == t[None]).astype(jnp.float32)         # (C, TH, W)

    # Partial reductions over the H tile -> (C, W); accumulate across the h axis.
    masked = probas * onehot
    inter_ref[0] += jnp.sum(masked, axis=1)
    card_ref[0] += jnp.sum(probas, axis=1) + jnp.sum(onehot, axis=1)

    # Cross-entropy without materializing log-softmax:
    #   -log p_target = log(denom) - (x_target - x_max)
    x_t = jnp.sum(x * onehot, axis=0, keepdims=True)      # (1, TH, W)
    ce_pix = jnp.log(denom) - (x_t - x_max)               # (1, TH, W)
    ce_ref[0] += jnp.sum(ce_pix, axis=1)                  # (1, W)


def _pick_tile_h(C, H, W, budget_bytes=20 << 20):
    """Largest H tile (multiple of 8 dividing H, or full H) whose double-buffered
    logits + targets blocks stay under the VMEM budget (safe for v7x's 64 MiB)."""
    def block_bytes(th):
        return 2 * (C * th * W + th * W) * 4   # 2x-buffered f32 logits + i32 targets
    if block_bytes(H) <= budget_bytes:
        return H
    cands = [d for d in range(8, H, 8) if H % d == 0]
    for th in sorted(cands, reverse=True):
        if block_bytes(th) <= budget_bytes:
            return th
    return cands[0] if cands else H


def dice_wce_loss(inputs, targets, smooth=1.0):
    """inputs: (N, C, H, W) float32 logits; targets: (N, H, W) int class ids."""
    N, C, H, W = inputs.shape
    TH = _pick_tile_h(C, H, W)

    tile_bytes = 2 * (C * TH * W + TH * W) * 4
    acc_bytes = 2 * (2 * C * W + W) * 4
    vmem_limit = int(min(max((tile_bytes + acc_bytes) * 3 // 2 + (4 << 20), 32 << 20),
                         48 << 20))

    inter, card, ce = pl.pallas_call(
        dice_wce_kernel,
        out_shape=(
            jax.ShapeDtypeStruct((N, C, W), jnp.float32),   # per-image intersection
            jax.ShapeDtypeStruct((N, C, W), jnp.float32),   # per-image cardinality
            jax.ShapeDtypeStruct((N, 1, W), jnp.float32),   # per-image CE column sums
        ),
        grid_spec=pltpu.PrefetchScalarGridSpec(
            num_scalar_prefetch=0,
            grid=(N, H // TH),
            in_specs=[
                pl.BlockSpec((1, C, TH, W), lambda n, h: (n, 0, h, 0)),
                pl.BlockSpec((1, TH, W), lambda n, h: (n, h, 0)),
            ],
            out_specs=[
                pl.BlockSpec((1, C, W), lambda n, h: (n, 0, 0)),
                pl.BlockSpec((1, C, W), lambda n, h: (n, 0, 0)),
                pl.BlockSpec((1, 1, W), lambda n, h: (n, 0, 0)),
            ],
        ),
        compiler_params=pltpu.CompilerParams(
            dimension_semantics=("parallel", "arbitrary"),
            vmem_limit_bytes=vmem_limit),
    )(inputs, targets.astype(jnp.int32))

    # Tiny finalize in plain JAX (keeps the batch grid axis parallel on v7x).
    inter_cw = jnp.sum(inter, axis=0)                      # (C, W)
    card_cw = jnp.sum(card, axis=0)                        # (C, W)
    dice = jnp.mean((2.0 * inter_cw + smooth) / (card_cw + smooth))
    wce = jnp.sum(ce) / float(N * H * W)
    return wce + (1.0 - dice)


def dice_wce_loss_ref(inputs, targets, smooth=1.0):
    """Pure-JAX reference mirroring the PyTorch forward exactly."""
    N, C, H, W = inputs.shape
    onehot = jax.nn.one_hot(targets, C, dtype=inputs.dtype)      # (N, H, W, C)
    onehot = jnp.transpose(onehot, (0, 3, 1, 2))                 # (N, C, H, W)
    probas = jax.nn.softmax(inputs, axis=1)
    dims = (0, 2)  # targets.ndim == 3 -> dims = (0, 2) in the original code
    inter = jnp.sum(probas * onehot, axis=dims)
    card = jnp.sum(probas + onehot, axis=dims)
    dice = jnp.mean((2.0 * inter + smooth) / (card + smooth))
    logp = jax.nn.log_softmax(inputs, axis=1)
    ce = -jnp.mean(jnp.sum(logp * onehot, axis=1))
    return ce + (1.0 - dice)


if __name__ == "__main__":
    key = jax.random.PRNGKey(0)
    k1, k2 = jax.random.split(key)
    N, C, H, W = 2, 4, 16, 16
    inputs = jax.random.normal(k1, (N, C, H, W), dtype=jnp.float32)
    targets = jax.random.randint(k2, (N, H, W), 0, C, dtype=jnp.int32)

    out = dice_wce_loss(inputs, targets, smooth=1.0)
    out = jax.block_until_ready(out)

    ref = dice_wce_loss_ref(inputs, targets, smooth=1.0)
    assert jnp.allclose(out, ref, atol=1e-5, rtol=1e-5), (out, ref)
    print("KERNEL_OK")
</pallas_src>

<mosaic_0001>
module attributes {stable_mosaic.version = 11 : i64} {
  func.func @dice_wce_kernel(%arg0: i32, %arg1: i32, %arg2: memref<1x4x16x16xf32, #tpu.memory_space<vmem>>, %arg3: memref<1x16x16xi32, #tpu.memory_space<vmem>>, %arg4: memref<1x4x16xf32, #tpu.memory_space<vmem>>, %arg5: memref<1x4x16xf32, #tpu.memory_space<vmem>>, %arg6: memref<1x1x16xf32, #tpu.memory_space<vmem>>) attributes {dimension_semantics = [#tpu.dimension_semantics<parallel>, #tpu.dimension_semantics<arbitrary>], iteration_bounds = array<i64: 2, 1>, scalar_prefetch = 0 : i64, scratch_operands = 0 : i64, tpu.core_type = #tpu.core_type<tc>, window_params = [{transform_indices = @transform_0, window_bounds = array<i64: 1, 4, 16, 16>}, {transform_indices = @transform_1, window_bounds = array<i64: 1, 16, 16>}, {transform_indices = @transform_2, window_bounds = array<i64: 1, 4, 16>}, {transform_indices = @transform_3, window_bounds = array<i64: 1, 4, 16>}, {transform_indices = @transform_4, window_bounds = array<i64: 1, 1, 16>}]} {
    %c0_i32 = arith.constant 0 : i32
    %0 = arith.cmpi eq, %arg1, %c0_i32 : i32
    %1 = arith.extui %0 : i1 to i32
    %c0_i32_0 = arith.constant 0 : i32
    %2 = arith.cmpi ne, %1, %c0_i32_0 : i32
    scf.if %2 {
      %cst_31 = arith.constant 0.000000e+00 : f32
      %53 = vector.broadcast %cst_31 : f32 to vector<1x4x16xf32>
      %c0_32 = arith.constant 0 : index
      %c0_33 = arith.constant 0 : index
      %c0_34 = arith.constant 0 : index
      %54 = vector.load %arg4[%c0_32, %c0_33, %c0_34] : memref<1x4x16xf32, #tpu.memory_space<vmem>>, vector<1x4x16xf32>
      tpu.vector_store %arg4[%c0_32, %c0_33, %c0_34], %53 {strides = array<i32>} : memref<1x4x16xf32, #tpu.memory_space<vmem>>, vector<1x4x16xf32>,
      %cst_35 = arith.constant 0.000000e+00 : f32
      %55 = vector.broadcast %cst_35 : f32 to vector<1x4x16xf32>
      %c0_36 = arith.constant 0 : index
      %c0_37 = arith.constant 0 : index
      %c0_38 = arith.constant 0 : index
      %56 = vector.load %arg5[%c0_36, %c0_37, %c0_38] : memref<1x4x16xf32, #tpu.memory_space<vmem>>, vector<1x4x16xf32>
      tpu.vector_store %arg5[%c0_36, %c0_37, %c0_38], %55 {strides = array<i32>} : memref<1x4x16xf32, #tpu.memory_space<vmem>>, vector<1x4x16xf32>,
      %cst_39 = arith.constant 0.000000e+00 : f32
      %57 = vector.broadcast %cst_39 : f32 to vector<1x1x16xf32>
      %c0_40 = arith.constant 0 : index
      %c0_41 = arith.constant 0 : index
      %c0_42 = arith.constant 0 : index
      %58 = vector.load %arg6[%c0_40, %c0_41, %c0_42] : memref<1x1x16xf32, #tpu.memory_space<vmem>>, vector<1x1x16xf32>
      tpu.vector_store %arg6[%c0_40, %c0_41, %c0_42], %57 {strides = array<i32>} : memref<1x1x16xf32, #tpu.memory_space<vmem>>, vector<1x1x16xf32>,
    } else {
    }
    %c0 = arith.constant 0 : index
    %c0_1 = arith.constant 0 : index
    %c0_2 = arith.constant 0 : index
    %c0_3 = arith.constant 0 : index
    %3 = vector.load %arg2[%c0, %c0_1, %c0_2, %c0_3] : memref<1x4x16x16xf32, #tpu.memory_space<vmem>>, vector<1x4x16x16xf32>
    %4 = vector.shape_cast %3 : vector<1x4x16x16xf32> to vector<4x16x16xf32>
    %c0_4 = arith.constant 0 : index
    %c0_5 = arith.constant 0 : index
    %c0_6 = arith.constant 0 : index
    %5 = vector.load %arg3[%c0_4, %c0_5, %c0_6] : memref<1x16x16xi32, #tpu.memory_space<vmem>>, vector<1x16x16xi32>
    %6 = vector.shape_cast %5 : vector<1x16x16xi32> to vector<16x16xi32>
    %cst = arith.constant dense<0xFF800000> : vector<16x16xf32>
    %7 = vector.multi_reduction <maximumf>, %4, %cst [0] : vector<4x16x16xf32> to vector<16x16xf32>
    %8 = vector.shape_cast %7 : vector<16x16xf32> to vector<1x16x16xf32>
    %9 = vector.broadcast %8 : vector<1x16x16xf32> to vector<4x16x16xf32>
    %10 = arith.subf %4, %9 : vector<4x16x16xf32>
    %11 = math.exp %10 : vector<4x16x16xf32>
    %cst_7 = arith.constant dense<0.000000e+00> : vector<16x16xf32>
    %12 = vector.multi_reduction <add>, %11, %cst_7 [0] : vector<4x16x16xf32> to vector<16x16xf32>
    %13 = vector.shape_cast %12 : vector<16x16xf32> to vector<1x16x16xf32>
    %14 = tpu.reciprocal %13 : vector<1x16x16xf32> -> vector<1x16x16xf32>
    %15 = vector.broadcast %14 : vector<1x16x16xf32> to vector<4x16x16xf32>
    %16 = arith.mulf %11, %15 : vector<4x16x16xf32>
    %17 = tpu.iota {dimensions = array<i32: 0>} : vector<4x16x16xi32>
    %18 = vector.shape_cast %6 : vector<16x16xi32> to vector<1x16x16xi32>
    %19 = vector.broadcast %18 : vector<1x16x16xi32> to vector<4x16x16xi32>
    %20 = arith.cmpi eq, %17, %19 : vector<4x16x16xi32>
    %21 = arith.extui %20 : vector<4x16x16xi1> to vector<4x16x16xi32>
    %22 = arith.sitofp %21 : vector<4x16x16xi32> to vector<4x16x16xf32>
    %23 = arith.mulf %16, %22 : vector<4x16x16xf32>
    %c0_8 = arith.constant 0 : index
    %c0_9 = arith.constant 0 : index
    %c0_10 = arith.constant 0 : index
    %24 = vector.load %arg4[%c0_8, %c0_9, %c0_10] : memref<1x4x16xf32, #tpu.memory_space<vmem>>, vector<1x4x16xf32>
    %25 = vector.shape_cast %24 : vector<1x4x16xf32> to vector<4x16xf32>
    %cst_11 = arith.constant dense<0.000000e+00> : vector<4x16xf32>
    %26 = vector.multi_reduction <add>, %23, %cst_11 [1] : vector<4x16x16xf32> to vector<4x16xf32>
    %27 = arith.addf %25, %26 : vector<4x16xf32>
    %c0_12 = arith.constant 0 : index
    %c0_13 = arith.constant 0 : index
    %c0_14 = arith.constant 0 : index
    %28 = vector.load %arg4[%c0_12, %c0_13, %c0_14] : memref<1x4x16xf32, #tpu.memory_space<vmem>>, vector<1x4x16xf32>
    %29 = vector.shape_cast %28 : vector<1x4x16xf32> to vector<4x16xf32>
    %30 = vector.shape_cast %27 : vector<4x16xf32> to vector<1x4x16xf32>
    tpu.vector_store %arg4[%c0_12, %c0_13, %c0_14], %30 {strides = array<i32>} : memref<1x4x16xf32, #tpu.memory_space<vmem>>, vector<1x4x16xf32>,
    %c0_15 = arith.constant 0 : index
    %c0_16 = arith.constant 0 : index
    %c0_17 = arith.constant 0 : index
    %31 = vector.load %arg5[%c0_15, %c0_16, %c0_17] : memref<1x4x16xf32, #tpu.memory_space<vmem>>, vector<1x4x16xf32>
    %32 = vector.shape_cast %31 : vector<1x4x16xf32> to vector<4x16xf32>
    %cst_18 = arith.constant dense<0.000000e+00> : vector<4x16xf32>
    %33 = vector.multi_reduction <add>, %16, %cst_18 [1] : vector<4x16x16xf32> to vector<4x16xf32>
    %cst_19 = arith.constant dense<0.000000e+00> : vector<4x16xf32>
    %34 = vector.multi_reduction <add>, %22, %cst_19 [1] : vector<4x16x16xf32> to vector<4x16xf32>
    %35 = arith.addf %33, %34 : vector<4x16xf32>
    %36 = arith.addf %32, %35 : vector<4x16xf32>
    %c0_20 = arith.constant 0 : index
    %c0_21 = arith.constant 0 : index
    %c0_22 = arith.constant 0 : index
    %37 = vector.load %arg5[%c0_20, %c0_21, %c0_22] : memref<1x4x16xf32, #tpu.memory_space<vmem>>, vector<1x4x16xf32>
    %38 = vector.shape_cast %37 : vector<1x4x16xf32> to vector<4x16xf32>
    %39 = vector.shape_cast %36 : vector<4x16xf32> to vector<1x4x16xf32>
    tpu.vector_store %arg5[%c0_20, %c0_21, %c0_22], %39 {strides = array<i32>} : memref<1x4x16xf32, #tpu.memory_space<vmem>>, vector<1x4x16xf32>,
    %40 = arith.mulf %4, %22 : vector<4x16x16xf32>
    %cst_23 = arith.constant dense<0.000000e+00> : vector<16x16xf32>
    %41 = vector.multi_reduction <add>, %40, %cst_23 [0] : vector<4x16x16xf32> to vector<16x16xf32>
    %42 = vector.shape_cast %41 : vector<16x16xf32> to vector<1x16x16xf32>
    %43 = math.log %13 : vector<1x16x16xf32>
    %44 = arith.subf %42, %8 : vector<1x16x16xf32>
    %45 = arith.subf %43, %44 : vector<1x16x16xf32>
    %c0_24 = arith.constant 0 : index
    %c0_25 = arith.constant 0 : index
    %c0_26 = arith.constant 0 : index
    %46 = vector.load %arg6[%c0_24, %c0_25, %c0_26] : memref<1x1x16xf32, #tpu.memory_space<vmem>>, vector<1x1x16xf32>
    %47 = vector.shape_cast %46 : vector<1x1x16xf32> to vector<1x16xf32>
    %cst_27 = arith.constant dense<0.000000e+00> : vector<1x16xf32>
    %48 = vector.multi_reduction <add>, %45, %cst_27 [1] : vector<1x16x16xf32> to vector<1x16xf32>
    %49 = arith.addf %47, %48 : vector<1x16xf32>
    %c0_28 = arith.constant 0 : index
    %c0_29 = arith.constant 0 : index
    %c0_30 = arith.constant 0 : index
    %50 = vector.load %arg6[%c0_28, %c0_29, %c0_30] : memref<1x1x16xf32, #tpu.memory_space<vmem>>, vector<1x1x16xf32>
    %51 = vector.shape_cast %50 : vector<1x1x16xf32> to vector<1x16xf32>
    %52 = vector.shape_cast %49 : vector<1x16xf32> to vector<1x1x16xf32>
    tpu.vector_store %arg6[%c0_28, %c0_29, %c0_30], %52 {strides = array<i32>} : memref<1x1x16xf32, #tpu.memory_space<vmem>>, vector<1x1x16xf32>,
    return
  }
  func.func @transform_0(%arg0: i32, %arg1: i32) -> (i32, i32, i32, i32) {
    %c0_i32 = arith.constant 0 : i32
    %c0_i32_0 = arith.constant 0 : i32
    %c0_i32_1 = arith.constant 0 : i32
    return %arg0, %c0_i32, %arg1, %c0_i32_0 : i32, i32, i32, i32
  }
  func.func @transform_1(%arg0: i32, %arg1: i32) -> (i32, i32, i32) {
    %c0_i32 = arith.constant 0 : i32
    %c0_i32_0 = arith.constant 0 : i32
    return %arg0, %arg1, %c0_i32 : i32, i32, i32
  }
  func.func @transform_2(%arg0: i32, %arg1: i32) -> (i32, i32, i32) {
    %c0_i32 = arith.constant 0 : i32
    %c0_i32_0 = arith.constant 0 : i32
    %c0_i32_1 = arith.constant 0 : i32
    return %arg0, %c0_i32, %c0_i32_0 : i32, i32, i32
  }
  func.func @transform_3(%arg0: i32, %arg1: i32) -> (i32, i32, i32) {
    %c0_i32 = arith.constant 0 : i32
    %c0_i32_0 = arith.constant 0 : i32
    %c0_i32_1 = arith.constant 0 : i32
    return %arg0, %c0_i32, %c0_i32_0 : i32, i32, i32
  }
  func.func @transform_4(%arg0: i32, %arg1: i32) -> (i32, i32, i32) {
    %c0_i32 = arith.constant 0 : i32
    %c0_i32_0 = arith.constant 0 : i32
    %c0_i32_1 = arith.constant 0 : i32
    return %arg0, %c0_i32, %c0_i32_0 : i32, i32, i32
  }
}

</mosaic_0001>

<bundles_post_ra>
// kernel: tpu_custom_call.1
= control target key start
LH: loop header
LB: loop body
LE: loop exit
PB: predicated region body
PF: predicated region fallthrough
CT: control target
= control target key end

     0   :  { %s1713_s0 = inlined_call_operand.hbm [shape: f32[2,4,16,16], index: 0, kind: input, shape index: {}]   ;;  %s1714_s1 = inlined_call_operand.hbm [shape: s32[2,16,16], index: 1, kind: input, shape index: {}]   ;;  %s1715_s2 = inlined_call_operand.hbm [shape: f32[2,4,16], index: 2, kind: output, shape index: {0}]   ;;  %s1716_s3 = inlined_call_operand.hbm [shape: f32[2,4,16], index: 3, kind: output, shape index: {1}]   ;;  %s1717_s4 = inlined_call_operand.hbm [shape: f32[2,1,16], index: 4, kind: output, shape index: {2}]  }
   0x1   :  { %1722 = sst [smem:[#allocation15_spill]] %s1713_s0 }
   0x2   :  { %10 = vsyncpa [#allocation3], 0 }
   0x3   :  { %12 = vsyncpa [#allocation3 + $0x1], 0 }
   0x4   :  { %13 = vsyncpa [#allocation6], 0 }
   0x5   :  { %15 = vsyncpa [#allocation6 + $0x1], 0 }
   0x6   :  { %16 = vsyncpa [#allocation4], 0 }
   0x7   :  { %18 = vsyncpa [#allocation4 + $0x1], 0 }
   0x8   :  { %19 = vsyncpa [#allocation9], 0 }
   0x9   :  { %21 = vsyncpa [#allocation9 + $0x1], 0  ;;  %s1180_s15 = smov 0   ;;  %s1182_s16 = smov 0  }
   0xa   :  { %s1184_s17 = smov 0   ;;  %s1186_s18 = smov 0  }
   0xb   :  { %s1188_s19 = smov 0   ;;  %s1190_s20 = smov 0  }
   0xc LB: > { %s1211_s21 = sadd.s32 4294967295, %s1145_s20   ;;  %s1719_s22 = sadd.s32 4294967294, %s1145_s20   ;;  %s1145_s20 = sphi %s1190_s20, %s27_s20   ;;  %s1141_s19 = sphi %s1188_s19, %s1741_s19   ;;  %s1137_s18 = sphi %s1186_s18, %s1740_s18   ;;  %s1133_s17 = sphi %s1184_s17, %s1739_s17   ;;  %s1129_s16 = sphi %s1182_s16, %s1738_s16   ;;  %s1125_s15 = sphi %s1180_s15, %s1737_s15  }
   0xd   : > { %s39_s23 = sadd.s32 1, %s1141_s19  ;;  %s48_s24 = sadd.s32 1, %s1133_s17 }
   0xe   : > { %p41_p0 = scmp.ge.s32.totalorder %s39_s23, 2  ;;  %p55_p1 = scmp.ne.s32.totalorder %s1133_s17, %s1129_s16 }
   0xf   : > { %p56_p2 = scmp.eq.s32.totalorder %s1145_s20, 0  ;;  %p61_p3 = scmp.ne.s32.totalorder %s1129_s16, %s1125_s15 }
  0x10   : > { %s1743_s23 = smov (%p41_p0, %s39_s23), 0  ;;  %p62_p5 = scmp.eq.s32.totalorder %s1211_s21, 0 }
  0x11   : > { %p1223_p4 = por %p56_p2, %p55_p1  ;;  %s43_s26 = ssub.s32 %s1141_s19, %s1743_s23 }
  0x12   : > { %p113_p6 = scmp.eq.s32.totalorder %s1211_s21, 1  ;;  %p46_p7 = scmp.eq.s32.totalorder %s43_s26, 0 }
  0x13   : > { %p1231_p8 = por %p62_p5, %p61_p3  ;;  %p119_p10 = scmp.eq.s32.totalorder %s1719_s22, 1 }
  0x14   : > { %p1235_p9 = por %p113_p6, %p55_p1  ;;  %p862_p13 = scmp.lt.s32.totalorder %s1145_s20, 2 }
  0x15   : > { %s1724_s27 = scalar_select %p1231_p8, 1, 0 }
  0x16   : > { %s1725_s28 = scalar_select %p1235_p9, 1, 0 }
  0x17   : > { %s1242_s29 = scalar_select %p46_p7, %s1133_s17, %s48_s24  }
  0x18   : > { %p1244_p11 = por %p119_p10, %p61_p3  ;;  %s1251_s5 = sand.u32 1, %s1133_s17  }
  0x19   : > { %s807_s6 = sshll.u32 %s1251_s5, 6  ;;  %s833_s7 = sshll.u32 %s1141_s19, 10 }
  0x1a   : > { %s1726_s30 = scalar_select %p1244_p11, 1, 0 }
  0x1b   : > { %s1727_s0 = sld [smem:[#allocation15_spill]]  ;;  %s195_s11 = scalar_lea.vmem [#allocation2], %s807_s6 }
  0x1c   : > { %s204_s12 = sshll.u32 %s195_s11, 4  ;;  %p1264_p0 = pnand %p862_p13, %p1223_p4  ;;  %s1260_s12 = int_to_ptr.vmem [resolvable:$true] %s204_s12 }
  0x1d   : > { %s192_s14 = scalar_lea.sflag [#allocation3], %s1251_s5 }
  0x1e   : > { %p941_p3 = pneg %p1264_p0 }
  0x21   : > { %s1258_s10 = scalar_lea.hbm %s1727_s0, %s833_s7  ;;  %s944_s25 = scalar_lea.hbm %s1727_s0, 2048 }
  0x22   : > { %s939_s24 = scalar_lea.hbm %s1258_s10, 1024  ;;  %p945_p4 = scmp.lt.u32.totalorder %s1258_s10, %s1727_s0 }
  0x23   : > { %p940_p2 = scmp.ne.s32.totalorder %s1258_s10, %s939_s24  ;;  %p946_p7 = scmp.lt.u32.totalorder %s944_s25, %s939_s24 }
  0x24   : > { %p948_p13 = scmp.lt.u32.totalorder %s939_s24, %s1258_s10 }
  0x25   : > { %p942_p5 = pnand %p941_p3, %p940_p2  ;;  %p947_p10 = por %p946_p7, %p945_p4 }
  0x27   : > { %p943_p6 = pneg %p942_p5  ;;  %p949_p12 = por %p948_p13, %p947_p10 }
  0x29   : > { %p950_p1 = pnand %p949_p12, %p943_p6 }
  0x2b   : > { %953 = shalt.err (!%p950_p1)
}
  0x2c   : > { %s954_s9 = scalar_lea.vmem %s1260_s12, 1024  ;;  %s1147_s11 = smov [#allocation2]  }
  0x2d   : > { %p955_p2 = scmp.ne.s32.totalorder %s1260_s12, %s954_s9  ;;  %s959_s26 = sshll.u32 %s1147_s11, 4  ;;  %s960_s26 = int_to_ptr.vmem [resolvable:$false] %s959_s26 }
  0x2e   : > { %s961_s6 = scalar_lea.vmem %s960_s26, 2048  ;;  %p962_p9 = scmp.lt.s32.totalorder %s1260_s12, %s960_s26 }
  0x2f   : > { %p957_p5 = pnand %p955_p2, %p941_p3  ;;  %p963_p4 = scmp.lt.s32.totalorder %s961_s6, %s954_s9 }
  0x31   : > { %p958_p11 = pneg %p957_p5  ;;  %p964_p7 = por %p963_p4, %p962_p9 }
  0x33   : > { %p965_p10 = pnand %p964_p7, %p958_p11 }
  0x35   : > { %968 = shalt.err (!%p965_p10)
}
  0x36   : > { %s1720_s24 = smov 128   ;;  %s1149_s25 = smov 8  }
  0x37   : > { %848 = dma.hbm_to_vmem [thread:$0]  (!%p1264_p0), %s1258_s10, 1024, %s1260_s12, %s192_s14, %s1720_s24, %s1720_s24, %s1149_s25  }
  0x38   : > { %p235_p9 = scmp.lt.s32.totalorder %s1145_s20, 3  ;;  %s810_s7 = sshll.u32 %s1251_s5, 4 }
  0x39   : > { %s834_s8 = sshll.u32 %s1141_s19, 8  ;;  %p1729_p11 = scmp.ge.s32.totalorder %s1145_s20, 1 }
  0x3a   : > { %s1312_s6 = scalar_lea.hbm %s1714_s1, %s834_s8  ;;  %s218_s22 = scalar_lea.vmem [#allocation5], %s810_s7 }
  0x3b   : > { %p1305_p12 = pnand %p1729_p11, %p235_p9  ;;  %s227_s0 = sshll.u32 %s218_s22, 4  ;;  %s1314_s0 = int_to_ptr.vmem [resolvable:$true] %s227_s0 }
  0x3c   : > { %s215_s10 = scalar_lea.sflag [#allocation6], %s1251_s5  ;;  %s969_s12 = scalar_lea.hbm %s1312_s6, 256 }
  0x3d   : > { %p970_p1 = scmp.ne.s32.totalorder %s1312_s6, %s969_s12  ;;  %s974_s8 = scalar_lea.hbm %s1714_s1, 512 }
  0x3e   : > { %p975_p2 = scmp.lt.u32.totalorder %s1312_s6, %s1714_s1  ;;  %p976_p5 = scmp.lt.u32.totalorder %s974_s8, %s969_s12 }
  0x3f   : > { %p972_p6 = pnand %p970_p1, %p941_p3  ;;  %p978_p7 = scmp.lt.u32.totalorder %s969_s12, %s1312_s6 }
  0x40   : > { %p977_p4 = por %p976_p5, %p975_p2 }
  0x41   : > { %p973_p13 = pneg %p972_p6 }
  0x42   : > { %p979_p10 = por %p978_p7, %p977_p4 }
  0x44   : > { %p980_p9 = pnand %p979_p10, %p973_p13 }
  0x46   : > { %983 = shalt.err (!%p980_p9)
}
  0x47   : > { %s984_s22 = scalar_lea.vmem %s1314_s0, 256  ;;  %s1150_s24 = smov [#allocation5]  }
  0x48   : > { %p985_p11 = scmp.ne.s32.totalorder %s1314_s0, %s984_s22  ;;  %s989_s7 = sshll.u32 %s1150_s24, 4  ;;  %s990_s7 = int_to_ptr.vmem [resolvable:$false] %s989_s7 }
  0x49   : > { %s991_s14 = scalar_lea.vmem %s990_s7, 512  ;;  %p992_p8 = scmp.lt.s32.totalorder %s1314_s0, %s990_s7 }
  0x4a   : > { %p987_p1 = pnand %p985_p11, %p941_p3  ;;  %p993_p2 = scmp.lt.s32.totalorder %s991_s14, %s984_s22 }
  0x4c   : > { %p988_p6 = pneg %p987_p1  ;;  %p994_p5 = por %p993_p2, %p992_p8 }
  0x4e   : > { %p995_p4 = pnand %p994_p5, %p988_p6 }
  0x50   : > { %998 = shalt.err (!%p995_p4)
}
  0x51   : > { %s1731_s12 = smov 128   ;;  %239 = sbr.rel (%p1305_p12) target bundleno = 225 (0xe1), region = 28 }
  0x52   : > { %851 = dma.hbm_to_vmem [thread:$0]  (!%p1264_p0), %s1312_s6, 256, %s1314_s0, %s215_s10, %s1731_s12, %s1731_s12, %s1149_s25  }
  0x53   : > { %s1348_s8 = sand.u32 (!%p1305_p12), 1, %s1129_s16   ;;  %p1732_p8 = scmp.ne.s32.totalorder (!%p1305_p12), %s1724_s27, 0 }
  0x54   : > { %s814_s11 = sshll.u32 (!%p1305_p12), %s1348_s8, 6  ;;  %s242_s26 = scalar_lea.sflag (!%p1305_p12), [#allocation3], %s1348_s8 }
  0x55   : > { %s245_s13 = scalar_lea.vmem (!%p1305_p12), [#allocation2], %s814_s11 }
  0x58   : > { %1108 = dma.done.wait (%p1732_p8), %s242_s26, 1024  }
  0x59   : > { %1110 = vsyncadd (%p1732_p8), %s242_s26, 4294966272  ;;  %s815_s0 = sshll.u32 %s1348_s8, 4  ;;  %s251_s5 = scalar_lea.sflag [#allocation6], %s1348_s8 }
  0x5a   : > { %s254_s25 = scalar_lea.vmem [#allocation5], %s815_s0 }
  0x5b   : > { %1112 = dma.done.wait (%p1732_p8), %s251_s5, 256  }
  0x5c   : > { %1114 = vsyncadd (%p1732_p8), %s251_s5, 4294967040  ;;  %s816_s9 = sshll.u32 %s1348_s8, 2  ;;  %vm299_vm0 = vcmask 125952   ;;  %vm302_vm1 = vcmask 122880   ;;  %v1151_v0 = vmov 0.0   ;;  %s1374_s27 = scalar_lea.vmem [#allocation10], %s1348_s8 }
  0x5d   : > { %s1363_s6 = scalar_lea.vmem [#allocation8], %s816_s9  ;;  %s1368_s10 = scalar_lea.vmem [#allocation7], %s816_s9  ;;  %303 = vst.msk [vmem:[%s1374_s27] sm:$0x1] %vm302_vm1, %v1151_v0  ;;  %vm314_vm2 = vcmask 130048   ;;  %v1379_v1 = vld [vmem:[%s245_s13] sm:$0xff] }
  0x5e   : > { %301 = vst.msk [vmem:[%s1363_s6] sm:$0xf] %vm299_vm0, %v1151_v0  ;;  %300 = vst.msk [vmem:[%s1368_s10] sm:$0xf] %vm299_vm0, %v1151_v0  ;;  %v1381_v2 = vld [vmem:[%s245_s13 + $0x8] sm:$0xff]  ;;  %v1383_v3 = vld [vmem:[%s245_s13 + $0x10] sm:$0xff] }
  0x5f   : > { %v1385_v4 = vld [vmem:[%s245_s13 + $0x18] sm:$0xff]  ;;  %v1387_v5 = vld [vmem:[%s245_s13 + $0x20] sm:$0xff]  ;;  %v1389_v6 = vld [vmem:[%s245_s13 + $0x28] sm:$0xff]  ;;  %v315_v7 = vsel %vm314_vm2, %v1379_v1, -inf  ;;  %v316_v8 = vsel %vm314_vm2, %v1383_v3, -inf  ;;  %v322_v9 = vsel %vm314_vm2, %v1381_v2, -inf }
  0x60   : > { %v1397_v10 = vld [vmem:[%s245_s13 + $0x30] sm:$0xff]  ;;  %v1399_v11 = vld [vmem:[%s245_s13 + $0x38] sm:$0xff]  ;;  %v317_v13 = vsel %vm314_vm2, %v1387_v5, -inf  ;;  %v323_v14 = vsel %vm314_vm2, %v1385_v4, -inf  ;;  %v324_v15 = vsel %vm314_vm2, %v1389_v6, -inf  ;;  %vm450_vm11 = vcmask 1041409  }
  0x61   : > { %v312_v12 = vld [vmem:[%s254_s25] sm:$0xff]  ;;  %v313_v16 = vld [vmem:[%s254_s25 + $0x8] sm:$0xff]  ;;  %v318_v17 = vmax.f32 %v315_v7, %v317_v13  ;;  %v319_v18 = vsel %vm314_vm2, %v1397_v10, -inf  ;;  %v325_v19 = vmax.f32 %v322_v9, %v324_v15  ;;  %v326_v20 = vsel %vm314_vm2, %v1399_v11, -inf  ;;  %s595_s22 = sand.u32 1, %s1211_s21   ;;  %s828_s24 = sshll.u32 %s1137_s18, 6 }
  0x62   : > { %v320_v21 = vmax.f32 %v316_v8, %v319_v18  ;;  %v327_v22 = vmax.f32 %v323_v14, %v326_v20  ;;  %vm377_vm3 = vcmp.eq.s32.totalorder %v312_v12, 0  ;;  %vm378_vm4 = vcmp.eq.s32.totalorder %v313_v16, 0  ;;  %s626_s7 = sshll.u32 %s1363_s6, 4  ;;  %s1585_s11 = scalar_lea.hbm %s1716_s3, %s828_s24  ;;  %s1587_s7 = int_to_ptr.vmem [resolvable:$true] %s626_s7 }
  0x63   : > { %vm379_vm5 = vcmp.eq.s32.totalorder %v312_v12, 1  ;;  %vm380_vm6 = vcmp.eq.s32.totalorder %v313_v16, 1  ;;  %vm381_vm7 = vcmp.eq.s32.totalorder %v312_v12, 2  ;;  %vm382_vm8 = vcmp.eq.s32.totalorder %v313_v16, 2  ;;  %s1596_s26 = scalar_lea.sflag [#allocation9], %s595_s22  ;;  %s999_s13 = scalar_lea.vmem %s1587_s7, 64 }
  0x64   : > { %v1411_v23 = vmax.f32 %v318_v17, %v320_v21  ;;  %v1413_v24 = vmax.f32 %v325_v19, %v327_v22  ;;  %vm383_vm9 = vcmp.eq.s32.totalorder %v312_v12, 3  ;;  %vm384_vm10 = vcmp.eq.s32.totalorder %v313_v16, 3  ;;  %p1000_p0 = scmp.ne.s32.totalorder %s1587_s7, %s999_s13  ;;  %p1733_p3 = scmp.ne.s32.totalorder %s1725_s28, 0 }
  0x65   : > { %v1416_v25 = vsel %vm377_vm3, 1.0, %v1151_v0  ;;  %v1419_v26 = vsel %vm378_vm4, 1.0, %v1151_v0  ;;  %v1422_v27 = vsel %vm379_vm5, 1.0, %v1151_v0  ;;  %v1425_v28 = vsel %vm380_vm6, 1.0, %v1151_v0  ;;  %s1152_s0 = smov [#allocation8]  }
  0x66   : > { %v329_v29 = vsub.f32 %v1379_v1, %v1411_v23  ;;  %v330_v30 = vsub.f32 %v1381_v2, %v1413_v24  ;;  %v331_v31 = vsub.f32 %v1383_v3, %v1411_v23  ;;  %v332_v32 = vsub.f32 %v1385_v4, %v1413_v24  ;;  %p1001_p12 = pnand %p1000_p0, %p1733_p3  ;;  %s1003_s5 = sshll.u32 %s1152_s0, 4  ;;  %s1004_s5 = int_to_ptr.vmem [resolvable:$false] %s1003_s5 }
  0x67   : > { %v333_v33 = vsub.f32 %v1387_v5, %v1411_v23  ;;  %v334_v34 = vsub.f32 %v1389_v6, %v1413_v24  ;;  %v335_v35 = vsub.f32 %v1397_v10, %v1411_v23  ;;  %v336_v36 = vsub.f32 %v1399_v11, %v1413_v24  ;;  %s1005_s25 = scalar_lea.vmem %s1004_s5, 128  ;;  %p1006_p7 = scmp.lt.s32.totalorder %s1587_s7, %s1004_s5 }
  0x68   : > { %v337_v37 = vmul.f32 1.442695, %v329_v29  ;;  %v339_v38 = vmul.f32 1.442695, %v330_v30  ;;  %v341_v39 = vmul.f32 1.442695, %v331_v31  ;;  %v547_v8 = vmul.f32 %v1416_v25, %v1379_v1  ;;  %p1002_p13 = pneg %p1001_p12  ;;  %p1007_p10 = scmp.lt.s32.totalorder %s1005_s25, %s999_s13 }
  0x69   : > { %v343_v40 = vmul.f32 1.442695, %v332_v32  ;;  %v345_v41 = vmul.f32 1.442695, %v333_v33  ;;  %v347_v42 = vmul.f32 1.442695, %v334_v34  ;;  %v549_v9 = vmul.f32 %v1422_v27, %v1383_v3 }
  0x6a   : > { %915 = vpow2.f32 %v337_v37  ;;  %v349_v43 = vmul.f32 1.442695, %v335_v35  ;;  %v351_v44 = vmul.f32 1.442695, %v336_v36  ;;  %v1445_v45 = vsel %vm381_vm7, 1.0, %v1151_v0  ;;  %p1008_p9 = por %p1007_p10, %p1006_p7 }
  0x6b   : > { %917 = vpow2.f32 %v339_v38  ;;  %v1449_v46 = vsel %vm382_vm8, 1.0, %v1151_v0  ;;  %v1453_v47 = vsel %vm383_vm9, 1.0, %v1151_v0  ;;  %v1457_v48 = vsel %vm384_vm10, 1.0, %v1151_v0 }
  0x6c   : > { %919 = vpow2.f32 %v341_v39  ;;  %v497_v49 = vsel %vm314_vm2, %v1416_v25, 0.0  ;;  %v498_v50 = vsel %vm314_vm2, %v1419_v26, 0.0  ;;  %v506_v51 = vsel %vm314_vm2, %v1422_v27, 0.0  ;;  %p1009_p11 = pnand %p1008_p9, %p1002_p13 }
  0x6d   : > { %921 = vpow2.f32 %v343_v40  ;;  %v499_v52 = vadd.f32 %v498_v50, %v497_v49  ;;  %v507_v53 = vsel %vm314_vm2, %v1425_v28, 0.0  ;;  %v515_v54 = vsel %vm314_vm2, %v1445_v45, 0.0 }
  0x6e   : > { %923 = vpow2.f32 %v345_v41  ;;  %v508_v55 = vadd.f32 %v507_v53, %v506_v51  ;;  %v516_v56 = vsel %vm314_vm2, %v1449_v46, 0.0  ;;  %v524_v57 = vsel %vm314_vm2, %v1453_v47, 0.0 }
  0x6f   : > { %925 = vpow2.f32 %v347_v42  ;;  %v517_v58 = vadd.f32 %v516_v56, %v515_v54  ;;  %v525_v59 = vsel %vm314_vm2, %v1457_v48, 0.0  ;;  %v500_v61 = vrot.slane %v499_v52, 4 }
  0x70   : > { %927 = vpow2.f32 %v349_v43  ;;  %v526_v60 = vadd.f32 %v525_v59, %v524_v57  ;;  %v509_v62 = vrot.slane %v508_v55, 4  ;;  %v548_v15 = vmul.f32 %v1419_v26, %v1381_v2 }
  0x71   : > { %929 = vpow2.f32 %v351_v44  ;;  %v518_v63 = vrot.slane %v517_v58, 4  ;;  %v501_v14 = vadd.f32 %v500_v61, %v499_v52  ;;  %v550_v1 = vmul.f32 %v1425_v28, %v1385_v4 }
  0x72   : > { %v527_v0 = vrot.slane %v526_v60, 4  ;;  %v510_v18 = vadd.f32 %v509_v62, %v508_v55  ;;  %v551_v3 = vmul.f32 %v1445_v45, %v1387_v5  ;;  %v552_v2 = vmul.f32 %v1449_v46, %v1389_v6 }
  0x73   : > { %v519_v21 = vadd.f32 %v518_v63, %v517_v58  ;;  %v555_v4 = vsel %vm314_vm2, %v547_v8, 0.0  ;;  %v556_v32 = vsel %vm314_vm2, %v549_v9, 0.0  ;;  %v502_v35 = vrot.slane %v501_v14, 2 }
  0x74   : > { %v1475_v7 = vpop.eup %915  ;;  %v528_v22 = vadd.f32 %v527_v0, %v526_v60  ;;  %v553_v36 = vmul.f32 %v1453_v47, %v1397_v10  ;;  %v511_v39 = vrot.slane %v510_v18, 2  ;;  %v554_v40 = vmul.f32 %v1457_v48, %v1399_v11 }
  0x75   : > { %v1481_v12 = vpop.eup %917  ;;  %v353_v13 = vsel %vm314_vm2, %v1475_v7, 0.0  ;;  %v520_v44 = vrot.slane %v519_v21, 2  ;;  %v557_v49 = vadd.f32 %v556_v32, %v555_v4  ;;  %v558_v10 = vsel %vm314_vm2, %v551_v3, 0.0 }
  0x76   : > { %v1487_v16 = vpop.eup %919  ;;  %v360_v17 = vsel %vm314_vm2, %v1481_v12, 0.0  ;;  %v529_v52 = vrot.slane %v528_v22, 2  ;;  %v562_v54 = vsel %vm314_vm2, %v548_v15, 0.0  ;;  %v563_v55 = vsel %vm314_vm2, %v550_v1, 0.0 }
  0x77   : > { %v1495_v19 = vpop.eup %921  ;;  %v354_v20 = vsel %vm314_vm2, %v1487_v16, 0.0  ;;  %v565_v56 = vsel %vm314_vm2, %v552_v2, 0.0  ;;  %v564_v11 = vadd.f32 %v563_v55, %v562_v54  ;;  %v503_v57 = vadd.f32 %v502_v35, %v501_v14 }
  0x78   : > { %v924_v29 = vpop.eup %923  ;;  %v355_v30 = vadd.f32 %v354_v20, %v353_v13  ;;  %v361_v31 = vsel %vm314_vm2, %v1495_v19, 0.0  ;;  %v512_v58 = vadd.f32 %v511_v39, %v510_v18  ;;  %v521_v59 = vadd.f32 %v520_v44, %v519_v21 }
  0x79   : > { %v926_v5 = vpop.eup %925  ;;  %v356_v33 = vsel %vm314_vm2, %v924_v29, 0.0  ;;  %v362_v34 = vadd.f32 %v361_v31, %v360_v17  ;;  %v530_v60 = vadd.f32 %v529_v52, %v528_v22  ;;  %v559_v61 = vadd.f32 %v558_v10, %v557_v49 }
  0x7a   : > { %v928_v37 = vpop.eup %927  ;;  %v357_v38 = vadd.f32 %v356_v33, %v355_v30  ;;  %v363_v6 = vsel %vm314_vm2, %v926_v5, 0.0  ;;  %v566_v62 = vadd.f32 %v565_v56, %v564_v11  ;;  %v560_v63 = vsel %vm314_vm2, %v553_v36, 0.0 }
  0x7b   : > { %v930_v41 = vpop.eup %929  ;;  %v358_v42 = vsel %vm314_vm2, %v928_v37, 0.0  ;;  %v364_v43 = vadd.f32 %v363_v6, %v362_v34  ;;  %v567_v0 = vsel %vm314_vm2, %v554_v40, 0.0  ;;  %v504_v8 = vrot.slane %v503_v57, 1 }
  0x7c   : > { %v359_v50 = vadd.f32 %v358_v42, %v357_v38  ;;  %v365_v51 = vsel %vm314_vm2, %v930_v41, 0.0  ;;  %v513_v9 = vrot.slane %v512_v58, 1  ;;  %v522_v13 = vrot.slane %v521_v59, 1 }
  0x7d   : > { %v366_v53 = vadd.f32 %v365_v51, %v364_v43  ;;  %v531_v15 = vrot.slane %v530_v60, 1  ;;  %v1519_v17 = vadd.f32 %v560_v63, %v559_v61  ;;  %v1521_v1 = vadd.f32 %v567_v0, %v566_v62 }
  0x7e   : > { %931 = vrcp.f32 %v359_v50  ;;  %v1523_v3 = vadd.f32 %v504_v8, %v503_v57  ;;  %v1525_v14 = vadd.f32 %v513_v9, %v512_v58  ;;  %v1527_v18 = vadd.f32 %v522_v13, %v521_v59 }
  0x7f   : > { %933 = vrcp.f32 %v366_v53  ;;  %v1529_v21 = vadd.f32 %v531_v15, %v530_v60  ;;  %v573_v22 = vsub.f32 %v1519_v17, %v1411_v23  ;;  %v574_v2 = vsub.f32 %v1521_v1, %v1413_v24 }
  0x80   : > { %935 = vlog2.f32 %v359_v50  ;;  %vm452_vm12 = vcmask 1042434   ;;  %vm454_vm13 = vcmask 1043459  }
  0x81   : > { %937 = vlog2.f32 %v366_v53 }
  0x88   : > { %v932_v20 = vpop.eup %931 }
  0x89   : > { %v934_v30 = vpop.eup %933  ;;  %v369_v31 = vmul.f32 %v932_v20, %v1475_v7  ;;  %v371_v4 = vmul.f32 %v932_v20, %v1487_v16  ;;  %v373_v32 = vmul.f32 %v932_v20, %v924_v29  ;;  %v375_v33 = vmul.f32 %v932_v20, %v928_v37 }
  0x8a   : > { %v370_v34 = vmul.f32 %v934_v30, %v1481_v12  ;;  %v372_v35 = vmul.f32 %v934_v30, %v1495_v19  ;;  %v374_v36 = vmul.f32 %v934_v30, %v926_v5  ;;  %v376_v38 = vmul.f32 %v934_v30, %v930_v41  ;;  %v936_v57 = vpop.eup %935 }
  0x8b   : > { %v461_v6 = vsel %vm314_vm2, %v369_v31, 0.0  ;;  %v470_v39 = vsel %vm314_vm2, %v371_v4, 0.0  ;;  %v479_v40 = vsel %vm314_vm2, %v373_v32, 0.0  ;;  %v488_v42 = vsel %vm314_vm2, %v375_v33, 0.0 }
  0x8c   : > { %v462_v7 = vsel %vm314_vm2, %v370_v34, 0.0  ;;  %v471_v16 = vsel %vm314_vm2, %v372_v35, 0.0  ;;  %v480_v29 = vsel %vm314_vm2, %v374_v36, 0.0  ;;  %v489_v12 = vsel %vm314_vm2, %v376_v38, 0.0 }
  0x8d   : > { %v463_v37 = vadd.f32 %v462_v7, %v461_v6  ;;  %v472_v19 = vadd.f32 %v471_v16, %v470_v39  ;;  %v481_v5 = vadd.f32 %v480_v29, %v479_v40  ;;  %v490_v41 = vadd.f32 %v489_v12, %v488_v42 }
  0x8e   : > { %v401_v43 = vmul.f32 %v1416_v25, %v369_v31  ;;  %v402_v44 = vmul.f32 %v1419_v26, %v370_v34  ;;  %v403_v49 = vmul.f32 %v1422_v27, %v371_v4  ;;  %v404_v50 = vmul.f32 %v1425_v28, %v372_v35  ;;  %v938_v27 = vpop.eup %937 }
  0x8f   : > { %v464_v51 = vrot.slane %v463_v37, 4  ;;  %v473_v52 = vrot.slane %v472_v19, 4  ;;  %v482_v10 = vrot.slane %v481_v5, 4  ;;  %v491_v53 = vrot.slane %v490_v41, 4 }
  0x90   : > { %v405_v54 = vmul.f32 %v1445_v45, %v373_v32  ;;  %v406_v55 = vmul.f32 %v1449_v46, %v374_v36  ;;  %v407_v56 = vmul.f32 %v1453_v47, %v375_v33  ;;  %v408_v11 = vmul.f32 %v1457_v48, %v376_v38 }
  0x91   : > { %v465_v25 = vadd.f32 %v464_v51, %v463_v37  ;;  %v474_v58 = vadd.f32 %v473_v52, %v472_v19  ;;  %v483_v26 = vadd.f32 %v482_v10, %v481_v5  ;;  %v492_v59 = vadd.f32 %v491_v53, %v490_v41 }
  0x92   : > { %v410_v28 = vsel %vm314_vm2, %v401_v43, 0.0  ;;  %v411_v60 = vsel %vm314_vm2, %v402_v44, 0.0  ;;  %v419_v61 = vsel %vm314_vm2, %v403_v49, 0.0  ;;  %v420_v45 = vsel %vm314_vm2, %v404_v50, 0.0 }
  0x93   : > { %v466_v46 = vrot.slane %v465_v25, 2  ;;  %v475_v47 = vrot.slane %v474_v58, 2  ;;  %v484_v62 = vrot.slane %v483_v26, 2  ;;  %v493_v48 = vrot.slane %v492_v59, 2 }
  0x94   : > { %v412_v63 = vadd.f32 %v411_v60, %v410_v28  ;;  %v421_v0 = vadd.f32 %v420_v45, %v419_v61  ;;  %v428_v8 = vsel %vm314_vm2, %v405_v54, 0.0  ;;  %v429_v9 = vsel %vm314_vm2, %v406_v55, 0.0  ;;  %v460_v54 = vld [vmem:[%s1363_s6] sm:$0xf] }
  0x95   : > { %v467_v13 = vadd.f32 %v466_v46, %v465_v25  ;;  %v476_v15 = vadd.f32 %v475_v47, %v474_v58  ;;  %v485_v20 = vadd.f32 %v484_v62, %v483_v26  ;;  %v494_v30 = vadd.f32 %v493_v48, %v492_v59 }
  0x96   : > { %v413_v31 = vrot.slane %v412_v63, 4  ;;  %v422_v4 = vrot.slane %v421_v0, 4  ;;  %v430_v32 = vadd.f32 %v429_v9, %v428_v8  ;;  %v437_v33 = vsel %vm314_vm2, %v407_v56, 0.0 }
  0x97   : > { %v468_v34 = vrot.slane %v467_v13, 1  ;;  %v477_v35 = vrot.slane %v476_v15, 1  ;;  %v486_v36 = vrot.slane %v485_v20, 1  ;;  %v495_v38 = vrot.slane %v494_v30, 1 }
  0x98   : > { %v414_v6 = vadd.f32 %v413_v31, %v412_v63  ;;  %v423_v39 = vadd.f32 %v422_v4, %v421_v0  ;;  %v431_v40 = vrot.slane %v430_v32, 4  ;;  %v438_v42 = vsel %vm314_vm2, %v408_v11, 0.0 }
  0x99   : > { %v469_v7 = vadd.f32 %v468_v34, %v467_v13  ;;  %v478_v16 = vadd.f32 %v477_v35, %v476_v15  ;;  %v487_v29 = vadd.f32 %v486_v36, %v485_v20  ;;  %v496_v12 = vadd.f32 %v495_v38, %v494_v30 }
  0x9a   : > { %v415_v37 = vrot.slane %v414_v6, 2  ;;  %v424_v19 = vrot.slane %v423_v39, 2  ;;  %v432_v5 = vadd.f32 %v431_v40, %v430_v32  ;;  %v439_v41 = vadd.f32 %v438_v42, %v437_v33 }
  0x9b   : > { %v533_v43 = vadd.f32 %v1523_v3, %v469_v7  ;;  %v534_v44 = vadd.f32 %v1525_v14, %v478_v16  ;;  %v535_v49 = vadd.f32 %v1527_v18, %v487_v29  ;;  %v536_v50 = vadd.f32 %v1529_v21, %v496_v12 }
  0x9c   : > { %v416_v51 = vadd.f32 %v415_v37, %v414_v6  ;;  %v425_v52 = vadd.f32 %v424_v19, %v423_v39  ;;  %v433_v10 = vrot.slane %v432_v5, 2  ;;  %v440_v53 = vrot.slane %v439_v41, 4 }
  0x9d   : > { %v541_v55 = vsel %vm450_vm11, %v534_v44, %v533_v43  ;;  %v570_v56 = vmul.f32 0.6931472, %v936_v57  ;;  %v572_v11 = vmul.f32 0.6931472, %v938_v27 }
  0x9e   : > { %v542_v3 = vsel %vm452_vm12, %v535_v49, %v541_v55  ;;  %v417_v14 = vrot.slane %v416_v51, 1  ;;  %v426_v18 = vrot.slane %v425_v52, 1  ;;  %v434_v25 = vadd.f32 %v433_v10, %v432_v5 }
  0x9f   : > { %v543_v21 = vsel %vm454_vm13, %v536_v50, %v542_v3  ;;  %v441_v58 = vadd.f32 %v440_v53, %v439_v41  ;;  %v575_v26 = vsub.f32 %v570_v56, %v573_v22  ;;  %v576_v59 = vsub.f32 %v572_v11, %v574_v2 }
  0xa0   : > { %v545_v57 = vadd.f32 %v543_v21, %v460_v54  ;;  %v418_v27 = vadd.f32 %v417_v14, %v416_v51  ;;  %v427_v28 = vadd.f32 %v426_v18, %v425_v52  ;;  %v435_v60 = vrot.slane %v434_v25, 1 }
  0xa1   : > { %v442_v23 = vrot.slane %v441_v58, 2  ;;  %v578_v24 = vsel %vm314_vm2, %v575_v26, 0.0  ;;  %v579_v17 = vsel %vm314_vm2, %v576_v59, 0.0 }
  0xa2   : > { %546 = vst.msk [vmem:[%s1363_s6] sm:$0xf] %vm299_vm0, %v545_v57  ;;  %v436_v1 = vadd.f32 %v435_v60, %v434_v25  ;;  %v580_v22 = vadd.f32 %v579_v17, %v578_v24  ;;  %v451_v61 = vsel %vm450_vm11, %v427_v28, %v418_v27 }
  0xa3   : > { %v443_v2 = vadd.f32 %v442_v23, %v441_v58 }
  0xa4   : > { %1012 = shalt.err (!%p1009_p11)
}
  0xa5   : > { %s1013_s21 = scalar_lea.hbm %s1585_s11, 64  ;;  %s1017_s22 = scalar_lea.hbm %s1716_s3, 128 }
  0xa6   : > { %p1014_p1 = scmp.ne.s32.totalorder %s1585_s11, %s1013_s21  ;;  %p1018_p5 = scmp.lt.u32.totalorder %s1585_s11, %s1716_s3 }
  0xa7   : > { %p1019_p4 = scmp.lt.u32.totalorder %s1017_s22, %s1013_s21  ;;  %p1021_p0 = scmp.lt.u32.totalorder %s1013_s21, %s1585_s11 }
  0xa8   : > { %p1015_p6 = pnand %p1014_p1, %p1733_p3 }
  0xa9   : > { %p1020_p8 = por %p1019_p4, %p1018_p5 }
  0xaa   : > { %p1016_p2 = pneg %p1015_p6 }
  0xab   : > { %p1022_p12 = por %p1021_p0, %p1020_p8 }
  0xad   : > { %p1023_p13 = pnand %p1022_p12, %p1016_p2 }
  0xaf   : > { %1026 = shalt.err (!%p1023_p13)
}
  0xb0   : > { %840 = dma.vmem_to_hbm [thread:$0]  (%p1733_p3), %s1587_s7, 64, %s1585_s11, %s1596_s26   ;;  %v581_v45 = vrot.slane %v580_v22, 4  ;;  %v444_v46 = vrot.slane %v443_v2, 1  ;;  %v453_v47 = vsel %vm452_vm12, %v436_v1, %v451_v61  ;;  %v409_v48 = vld [vmem:[%s1368_s10] sm:$0xf] }
  0xb1   : > { %s613_s13 = sshll.u32 %s1368_s10, 4  ;;  %s1629_s0 = scalar_lea.hbm %s1715_s2, %s828_s24  ;;  %v577_v20 = vld [vmem:[%s1374_s27] sm:$0x1]  ;;  %s1631_s13 = int_to_ptr.vmem [resolvable:$true] %s613_s13 }
  0xb2   : > { %v582_v62 = vadd.f32 %v581_v45, %v580_v22  ;;  %v445_v63 = vadd.f32 %v444_v46, %v443_v2  ;;  %s639_s5 = sshll.u32 %s1374_s27, 4  ;;  %s830_s25 = sshll.u32 %s1137_s18, 4  ;;  %s1662_s5 = int_to_ptr.vmem [resolvable:$true] %s639_s5 }
  0xb3   : > { %s591_s21 = scalar_lea.sflag [#allocation4], %s1348_s8  ;;  %s1027_s9 = scalar_lea.vmem %s1631_s13, 64 }
  0xb4   : > { %v583_v0 = vrot.slane %v582_v62, 2  ;;  %v455_v8 = vsel %vm454_vm13, %v445_v63, %v453_v47  ;;  %p1028_p7 = scmp.ne.s32.totalorder %s1631_s13, %s1027_s9  ;;  %s1153_s6 = smov [#allocation7]  }
  0xb5   : > { %v457_v9 = vadd.f32 %v455_v8, %v409_v48  ;;  %s1031_s24 = sshll.u32 %s1153_s6, 4  ;;  %s1032_s24 = int_to_ptr.vmem [resolvable:$false] %s1031_s24 }
  0xb6   : > { %v584_v13 = vadd.f32 %v583_v0, %v582_v62  ;;  %p1029_p10 = pnand %p1028_p7, %p1733_p3  ;;  %s1033_s22 = scalar_lea.vmem %s1032_s24, 128 }
  0xb7   : > { %459 = vst.msk [vmem:[%s1368_s10] sm:$0xf] %vm299_vm0, %v457_v9  ;;  %p1034_p11 = scmp.lt.s32.totalorder %s1631_s13, %s1032_s24  ;;  %p1035_p1 = scmp.lt.s32.totalorder %s1033_s22, %s1027_s9 }
  0xb8   : > { %v585_v15 = vrot.slane %v584_v13, 1  ;;  %p1030_p9 = pneg %p1029_p10 }
  0xb9   : > { %p1036_p6 = por %p1035_p1, %p1034_p11 }
  0xbb   : > { %p1037_p2 = pnand %p1036_p6, %p1030_p9 }
  0xbd   : > { %1040 = shalt.err (!%p1037_p2)
}
  0xbe   : > { %s1041_s8 = scalar_lea.hbm %s1629_s0, 64  ;;  %s1045_s12 = scalar_lea.hbm %s1715_s2, 128 }
  0xbf   : > { %p1042_p5 = scmp.ne.s32.totalorder %s1629_s0, %s1041_s8  ;;  %p1046_p0 = scmp.lt.u32.totalorder %s1629_s0, %s1715_s2 }
  0xc0   : > { %p1047_p12 = scmp.lt.u32.totalorder %s1045_s12, %s1041_s8  ;;  %p1049_p7 = scmp.lt.u32.totalorder %s1041_s8, %s1629_s0 }
  0xc1   : > { %p1043_p4 = pnand %p1042_p5, %p1733_p3 }
  0xc2   : > { %p1048_p13 = por %p1047_p12, %p1046_p0 }
  0xc3   : > { %p1044_p8 = pneg %p1043_p4 }
  0xc4   : > { %p1050_p10 = por %p1049_p7, %p1048_p13 }
  0xc6   : > { %p1051_p9 = pnand %p1050_p10, %p1044_p8 }
  0xc8   : > { %1054 = shalt.err (!%p1051_p9)
}
  0xc9   : > { %839 = dma.vmem_to_hbm [thread:$0]  (%p1733_p3), %s1631_s13, 64, %s1629_s0, %s591_s21   ;;  %v586_v30 = vadd.f32 %v585_v15, %v584_v13 }
  0xca   : > { %s637_s24 = scalar_lea.hbm %s1717_s4, %s830_s25  ;;  %s1055_s22 = scalar_lea.vmem %s1662_s5, 16 }
  0xcb   : > { %v587_v31 = vadd.f32 %v586_v30, %v577_v20  ;;  %p1056_p11 = scmp.ne.s32.totalorder %s1662_s5, %s1055_s22  ;;  %s1154_s13 = smov [#allocation10]  }
  0xcc   : > { %s1059_s0 = sshll.u32 %s1154_s13, 4  ;;  %s1060_s0 = int_to_ptr.vmem [resolvable:$false] %s1059_s0 }
  0xcd   : > { %589 = vst.msk [vmem:[%s1374_s27] sm:$0x1] %vm302_vm1, %v587_v31  ;;  %p1057_p1 = pnand %p1056_p11, %p1733_p3  ;;  %s1061_s21 = scalar_lea.vmem %s1060_s0, 32 }
  0xce   : > { %p1062_p2 = scmp.lt.s32.totalorder %s1662_s5, %s1060_s0  ;;  %p1063_p5 = scmp.lt.s32.totalorder %s1061_s21, %s1055_s22 }
  0xcf   : > { %p1058_p6 = pneg %p1057_p1 }
  0xd0   : > { %p1064_p4 = por %p1063_p5, %p1062_p2 }
  0xd2   : > { %p1065_p8 = pnand %p1064_p4, %p1058_p6 }
  0xd4   : > { %1068 = shalt.err (!%p1065_p8)
}
  0xd5   : > { %s1069_s18 = scalar_lea.hbm %s637_s24, 16  ;;  %s1073_s8 = scalar_lea.hbm %s1717_s4, 32 }
  0xd6   : > { %p1070_p0 = scmp.ne.s32.totalorder %s637_s24, %s1069_s18  ;;  %p1074_p7 = scmp.lt.u32.totalorder %s637_s24, %s1717_s4 }
  0xd7   : > { %p1075_p10 = scmp.lt.u32.totalorder %s1073_s8, %s1069_s18  ;;  %p1077_p11 = scmp.lt.u32.totalorder %s1069_s18, %s637_s24 }
  0xd8   : > { %p1071_p12 = pnand %p1070_p0, %p1733_p3 }
  0xd9   : > { %p1076_p9 = por %p1075_p10, %p1074_p7 }
  0xda   : > { %p1072_p13 = pneg %p1071_p12 }
  0xdb   : > { %p1078_p1 = por %p1077_p11, %p1076_p9 }
  0xdd   : > { %p1079_p6 = pnand %p1078_p1, %p1072_p13 }
  0xdf   : > { %1082 = shalt.err (!%p1079_p6)
}
  0xe0   : > { %841 = dma.vmem_to_hbm [thread:$0]  (%p1733_p3), %s1662_s5, 16, %s637_s24, %s1596_s26  }
  0xe1 PF: > { %s651_s12 = sand.u32 1, %s1125_s15   ;;  %p1734_p2 = scmp.ne.s32.totalorder %s1726_s30, 0 }
  0xe2   : > { %p1735_p5 = scmp.ge.s32.totalorder %s1145_s20, 2  ;;  %s652_s7 = scalar_lea.sflag [#allocation4], %s651_s12 }
  0xe4   : > { %p853_p4 = pnand %p1735_p5, %p1734_p2 }
  0xe6   : > { %1116 = dma.done.wait (!%p853_p4), %s652_s7, 64  }
  0xe7   : > { %1118 = vsyncadd (!%p853_p4), %s652_s7, 4294967232  ;;  %s1736_s11 = sadd.s32 4294967294, %s1145_s20  }
  0xe8   : > { %s660_s9 = sand.u32 1, %s1736_s11  }
  0xe9   : > { %s661_s6 = scalar_lea.sflag [#allocation9], %s660_s9 }
  0xea   : > { %1120 = dma.done.wait (!%p853_p4), %s661_s6, 80  }
  0xeb   : > { %1122 = vsyncadd (!%p853_p4), %s661_s6, 4294967216  ;;  %s27_s20 = sadd.s32 1, %s1145_s20   ;;  %s1737_s15 = smov %s1129_s16 }
  0xec   : > { %p24_p3 = scmp.ge.s32.totalorder %s27_s20, 4   ;;  %s1738_s16 = smov %s1133_s17 }
  0xed   : > { %s1739_s17 = smov %s1242_s29  ;;  %s1740_s18 = smov %s1141_s19 }
  0xee   : > { %s1741_s19 = smov %s1743_s23  ;;  %26 = sbr.rel (!%p24_p3) target bundleno = 12 (0xc), region = 122 }
  0xf5   :  { %674 = vsyncpa [#allocation3], 1 }
  0xf6   :  { %676 = vsyncpa [#allocation3 + $0x1], 1 }
  0xf7   :  { %677 = vsyncpa [#allocation6], 1 }
  0xf8   :  { %679 = vsyncpa [#allocation6 + $0x1], 1 }
  0xf9   :  { %680 = vsyncpa [#allocation4], 1 }
  0xfa   :  { %682 = vsyncpa [#allocation4 + $0x1], 1 }
  0xfb   :  { %683 = vsyncpa [#allocation9], 1 }
  0xfc   :  { %685 = vsyncpa [#allocation9 + $0x1], 1 }

</bundles_post_ra>
